<compile_context>
chip_gen: v6e
topology: v6e:2x2x1
jax: 0.10.0
libtpu: 0.0.40
codegen_flags: <defaults>
</compile_context>

<pallas_src>
import functools

import jax
import jax.numpy as jnp
from jax.experimental import pallas as pl
from jax.experimental.pallas import tpu as pltpu


def _round_up(x: int, m: int) -> int:
    return ((x + m - 1) // m) * m


def _vmem_capacity_bytes() -> int:
    """Physical VMEM per TensorCore; conservative (v7x, 64 MiB) fallback."""
    try:
        info = pltpu.get_tpu_info()
        cap = int(getattr(info, "vmem_capacity_bytes", 0))
        if cap > 0:
            return cap
    except Exception:
        pass
    return 64 * 1024 * 1024


_VMEM_CAP = _vmem_capacity_bytes()


def ddpg_kernel(s_ref, w1_ref, b1_ref, w2_ref, b2_ref, act_ref, *, max_action):
    # input_processing: Linear(D, H) + ReLU.  The activation tile is cast to
    # bf16 right at the MXU operand (in-VMEM, hidden under the tile DMA);
    # accumulation stays f32 via preferred_element_type.
    s_bf = s_ref[...].astype(jnp.bfloat16)
    h = jnp.dot(s_bf, w1_ref[...], preferred_element_type=jnp.float32)
    h = jnp.maximum(h + b1_ref[...], 0.0)             # b1 is (1, H) -> broadcast
    # mu head: Linear(H, O).  Tiny ([TB,32]@[32,4]); keep it in f32.
    mu = jnp.dot(h, w2_ref[...], preferred_element_type=jnp.float32) + b2_ref[...]
    # action = max_action * tanh(mu)   (tanh -> EUP, scale -> VPU filler)
    act_ref[...] = (max_action * jnp.tanh(mu)).astype(act_ref.dtype)


def _pick_batch_tile(batch, d, in_itemsize, n_hidden, out_dim, tb_max, vmem_budget):
    """Largest 16-aligned batch tile whose pipelined working set fits VMEM,
    clamped so batch >= 32 still yields >= 2 tiles (feeds v7x's 2 TCs)."""
    tb = min(tb_max, _round_up(batch, 16))
    if batch >= 32:
        tb = min(tb, _round_up(pl.cdiv(batch, 2), 16))   # keep >= 2 grid steps

    resident = 2 * (d * n_hidden * 2 + n_hidden * 4
                    + n_hidden * out_dim * 4 + out_dim * 4)

    def working_set(t):
        return (3 * t * d * in_itemsize                # (up to) triple-buffered s tiles
                + 2 * t * out_dim * 4                  # double-buffered f32 out tiles
                + t * n_hidden * 4                     # h intermediate
                + resident
                + (2 << 20))                           # compiler slack

    while tb > 16 and working_set(tb) > vmem_budget:
        tb = max(16, _round_up(tb // 2, 16))

    if tb >= batch:
        tb = batch        # single full-extent block (full-dim blocks need no alignment)
    return tb


@functools.partial(jax.jit, static_argnames=("max_action", "tb_max"))
def _ddpg_forward_impl(s, w1, b1, w2, b2, *, max_action, tb_max):
    batch = s.shape[0]
    s_flat = s.reshape(batch, -1)                      # s.view(batch_size, -1)
    d = s_flat.shape[1]
    in_itemsize = jnp.dtype(s_flat.dtype).itemsize

    # Resident (tiny) parameters: w1 in bf16 (one-time cast), the rest f32.
    w1 = w1.astype(jnp.bfloat16)
    b1 = b1.reshape(1, -1).astype(jnp.float32)
    w2 = w2.astype(jnp.float32)
    b2 = b2.reshape(1, -1).astype(jnp.float32)
    n_hidden = w1.shape[1]
    out_dim = w2.shape[1]

    # Generation-aware VMEM budget (64 MiB physical on v7x, 128 MiB on v5e/v6e).
    vmem_budget = max(min(int(0.70 * _VMEM_CAP), 96 * 1024 * 1024),
                      32 * 1024 * 1024)

    tb = _pick_batch_tile(batch, d, in_itemsize, n_hidden, out_dim,
                          int(tb_max), vmem_budget)
    n_tiles = pl.cdiv(batch, tb)   # partial last tile: rows independent, writeback masked

    s_spec_kwargs = {}
    if n_tiles >= 3 and hasattr(pl, "Buffered"):
        # DMA-limited pipeline: a third input buffer hides DMA-issue latency.
        s_spec_kwargs["pipeline_mode"] = pl.Buffered(3)

    kernel = functools.partial(ddpg_kernel, max_action=max_action)

    action = pl.pallas_call(
        kernel,
        out_shape=jax.ShapeDtypeStruct((batch, out_dim), jnp.float32),
        grid=(n_tiles,),
        in_specs=[
            pl.BlockSpec((tb, d), lambda i: (i, 0), **s_spec_kwargs),  # s tile (native dtype)
            pl.BlockSpec((d, n_hidden), lambda i: (0, 0)),             # w1 resident (bf16)
            pl.BlockSpec((1, n_hidden), lambda i: (0, 0)),             # b1 resident
            pl.BlockSpec((n_hidden, out_dim), lambda i: (0, 0)),       # w2 resident
            pl.BlockSpec((1, out_dim), lambda i: (0, 0)),              # b2 resident
        ],
        out_specs=pl.BlockSpec((tb, out_dim), lambda i: (i, 0)),
        compiler_params=pltpu.CompilerParams(
            dimension_semantics=("parallel",),       # shards tiles on v7x's 2 TCs
            vmem_limit_bytes=vmem_budget,
        ),
    )(s_flat, w1, b1, w2, b2)

    return action


def ddpg_forward(s, params, max_action, *, tb_max=2048):
    """Pallas implementation of DDPGNetwork.forward.

    Args:
      s: array of shape [B, C, H, W] (or any [B, ...]). Floating dtypes pass
         through untouched (read from HBM exactly once; in-kernel bf16 cast at
         the MXU operand); non-float inputs are cast to f32 like the PyTorch
         module does.
      params: dict with w1 [D, H], b1 [H], w2 [H, O], b2 [O].
      max_action: python float / scalar (baked into the kernel as a constant).
    Returns:
      (action, None) matching the PyTorch module's return signature.
    """
    s = jnp.asarray(s)
    if not jnp.issubdtype(s.dtype, jnp.floating):
        s = s.astype(jnp.float32)
    action = _ddpg_forward_impl(
        s, params["w1"], params["b1"], params["w2"], params["b2"],
        max_action=float(max_action), tb_max=int(tb_max))
    return action, None


def init_params(key, in_dim, n_hidden, out_dim):
    """Deterministic synthetic weights (PyTorch-Linear-like uniform init)."""
    k1, k2, k3, k4 = jax.random.split(key, 4)
    bound1 = 1.0 / jnp.sqrt(in_dim)
    bound2 = 1.0 / jnp.sqrt(n_hidden)
    return {
        "w1": jax.random.uniform(k1, (in_dim, n_hidden), jnp.float32, -bound1, bound1),
        "b1": jax.random.uniform(k2, (n_hidden,), jnp.float32, -bound1, bound1),
        "w2": jax.random.uniform(k3, (n_hidden, out_dim), jnp.float32, -bound2, bound2),
        "b2": jax.random.uniform(k4, (out_dim,), jnp.float32, -bound2, bound2),
    }


def _references(s, params, max_action):
    """(a) bf16-matched reference (tight tol), (b) pure-f32 reference (loose tol)."""
    s_flat = s.reshape(s.shape[0], -1)
    hid_bf = jnp.maximum(
        jnp.dot(s_flat.astype(jnp.bfloat16), params["w1"].astype(jnp.bfloat16),
                preferred_element_type=jnp.float32) + params["b1"], 0.0)
    ref_bf = max_action * jnp.tanh(hid_bf @ params["w2"] + params["b2"])
    hid_f32 = jnp.maximum(s_flat @ params["w1"] + params["b1"], 0.0)
    ref_f32 = max_action * jnp.tanh(hid_f32 @ params["w2"] + params["b2"])
    return ref_bf, ref_f32


if __name__ == "__main__":
    key = jax.random.PRNGKey(0)
    k_s, k_p, k_s2 = jax.random.split(key, 3)

    # Small shapes consistent with the forward pass.
    B, C, H, W = 2, 4, 16, 16          # observation -> flattened to [2, 1024]
    n_hidden = 32                      # input_processing hidden width
    output_dim = 4                     # action dimension
    max_action = 2.0

    s = jax.random.normal(k_s, (B, C, H, W), dtype=jnp.float32)
    params = init_params(k_p, C * H * W, n_hidden, output_dim)

    action, state = ddpg_forward(s, params, max_action)
    action = jax.block_until_ready(action)

    ref_bf, ref_f32 = _references(s, params, max_action)
    assert action.shape == (B, output_dim)
    assert state is None
    assert jnp.allclose(action, ref_bf, atol=1e-2, rtol=1e-2)
    assert jnp.allclose(action, ref_f32, atol=5e-2, rtol=5e-2)

    # Second check: batch not a multiple of the tile -> exercises the un-padded
    # partial edge block and (with tb_max=64 -> 4 tiles) the Buffered(3)
    # input pipeline; last tile has only 8 valid rows.
    B2 = 200
    s2 = jax.random.normal(k_s2, (B2, C, H, W), dtype=jnp.float32)
    action2, _ = ddpg_forward(s2, params, max_action, tb_max=64)
    action2 = jax.block_until_ready(action2)
    ref2_bf, ref2_f32 = _references(s2, params, max_action)
    assert action2.shape == (B2, output_dim)
    assert jnp.allclose(action2, ref2_bf, atol=1e-2, rtol=1e-2)
    assert jnp.allclose(action2, ref2_f32, atol=5e-2, rtol=5e-2)

    print("KERNEL_OK")
</pallas_src>

<mosaic_0001>
module attributes {stable_mosaic.version = 11 : i64} {
  func.func @ddpg_kernel(%arg0: i32, %arg1: memref<2x1024xf32, #tpu.memory_space<vmem>>, %arg2: memref<1024x32xbf16, #tpu.memory_space<vmem>>, %arg3: memref<1x32xf32, #tpu.memory_space<vmem>>, %arg4: memref<32x4xf32, #tpu.memory_space<vmem>>, %arg5: memref<1x4xf32, #tpu.memory_space<vmem>>, %arg6: memref<2x4xf32, #tpu.memory_space<vmem>>) attributes {dimension_semantics = [#tpu.dimension_semantics<parallel>], iteration_bounds = array<i64: 1>, scalar_prefetch = 0 : i64, scratch_operands = 0 : i64, tpu.core_type = #tpu.core_type<tc>, window_params = [{transform_indices = @transform_0, window_bounds = array<i64: 2, 1024>}, {pipeline_mode = #tpu.pipeline_mode<synchronous>, transform_indices = @transform_1, window_bounds = array<i64: 1024, 32>}, {pipeline_mode = #tpu.pipeline_mode<synchronous>, transform_indices = @transform_2, window_bounds = array<i64: 1, 32>}, {pipeline_mode = #tpu.pipeline_mode<synchronous>, transform_indices = @transform_3, window_bounds = array<i64: 32, 4>}, {pipeline_mode = #tpu.pipeline_mode<synchronous>, transform_indices = @transform_4, window_bounds = array<i64: 1, 4>}, {transform_indices = @transform_5, window_bounds = array<i64: 2, 4>}]} {
    %c0 = arith.constant 0 : index
    %c0_0 = arith.constant 0 : index
    %0 = vector.load %arg1[%c0, %c0_0] : memref<2x1024xf32, #tpu.memory_space<vmem>>, vector<2x1024xf32>
    %1 = arith.truncf %0 : vector<2x1024xf32> to vector<2x1024xbf16>
    %c0_1 = arith.constant 0 : index
    %c0_2 = arith.constant 0 : index
    %2 = vector.load %arg2[%c0_1, %c0_2] : memref<1024x32xbf16, #tpu.memory_space<vmem>>, vector<1024x32xbf16>
    %cst = arith.constant dense<0.000000e+00> : vector<2x32xf32>
    %3 = tpu.matmul %1, %2, %cst {dimension_numbers = #tpu.dot_dimension_numbers<[1], [0], [0], [1], [0, 0, 1, 1], [], []>} : vector<2x1024xbf16>, vector<1024x32xbf16>, vector<2x32xf32> -> vector<2x32xf32>
    %c0_3 = arith.constant 0 : index
    %c0_4 = arith.constant 0 : index
    %4 = vector.load %arg3[%c0_3, %c0_4] : memref<1x32xf32, #tpu.memory_space<vmem>>, vector<1x32xf32>
    %5 = vector.broadcast %4 : vector<1x32xf32> to vector<2x32xf32>
    %6 = arith.addf %3, %5 : vector<2x32xf32>
    %cst_5 = arith.constant 0.000000e+00 : f32
    %7 = vector.broadcast %cst_5 : f32 to vector<2x32xf32>
    %8 = arith.maximumf %6, %7 : vector<2x32xf32>
    %c0_6 = arith.constant 0 : index
    %c0_7 = arith.constant 0 : index
    %9 = vector.load %arg4[%c0_6, %c0_7] : memref<32x4xf32, #tpu.memory_space<vmem>>, vector<32x4xf32>
    %cst_8 = arith.constant dense<0.000000e+00> : vector<2x4xf32>
    %10 = tpu.matmul %8, %9, %cst_8 {dimension_numbers = #tpu.dot_dimension_numbers<[1], [0], [0], [1], [0, 0, 1, 1], [], []>} : vector<2x32xf32>, vector<32x4xf32>, vector<2x4xf32> -> vector<2x4xf32>
    %c0_9 = arith.constant 0 : index
    %c0_10 = arith.constant 0 : index
    %11 = vector.load %arg5[%c0_9, %c0_10] : memref<1x4xf32, #tpu.memory_space<vmem>>, vector<1x4xf32>
    %12 = vector.broadcast %11 : vector<1x4xf32> to vector<2x4xf32>
    %13 = arith.addf %10, %12 : vector<2x4xf32>
    %14 = math.tanh %13 : vector<2x4xf32>
    %cst_11 = arith.constant 2.000000e+00 : f32
    %15 = vector.broadcast %cst_11 : f32 to vector<2x4xf32>
    %16 = arith.mulf %15, %14 : vector<2x4xf32>
    %c0_12 = arith.constant 0 : index
    %c0_13 = arith.constant 0 : index
    %17 = vector.load %arg6[%c0_12, %c0_13] : memref<2x4xf32, #tpu.memory_space<vmem>>, vector<2x4xf32>
    tpu.vector_store %arg6[%c0_12, %c0_13], %16 {strides = array<i32>} : memref<2x4xf32, #tpu.memory_space<vmem>>, vector<2x4xf32>,
    return
  }
  func.func @transform_0(%arg0: i32) -> (i32, i32) {
    %c0_i32 = arith.constant 0 : i32
    %c0_i32_0 = arith.constant 0 : i32
    return %arg0, %c0_i32 : i32, i32
  }
  func.func @transform_1(%arg0: i32) -> (i32, i32) {
    %c0_i32 = arith.constant 0 : i32
    %c0_i32_0 = arith.constant 0 : i32
    %c0_i32_1 = arith.constant 0 : i32
    return %c0_i32, %c0_i32_0 : i32, i32
  }
  func.func @transform_2(%arg0: i32) -> (i32, i32) {
    %c0_i32 = arith.constant 0 : i32
    %c0_i32_0 = arith.constant 0 : i32
    %c0_i32_1 = arith.constant 0 : i32
    return %c0_i32, %c0_i32_0 : i32, i32
  }
  func.func @transform_3(%arg0: i32) -> (i32, i32) {
    %c0_i32 = arith.constant 0 : i32
    %c0_i32_0 = arith.constant 0 : i32
    %c0_i32_1 = arith.constant 0 : i32
    return %c0_i32, %c0_i32_0 : i32, i32
  }
  func.func @transform_4(%arg0: i32) -> (i32, i32) {
    %c0_i32 = arith.constant 0 : i32
    %c0_i32_0 = arith.constant 0 : i32
    %c0_i32_1 = arith.constant 0 : i32
    return %c0_i32, %c0_i32_0 : i32, i32
  }
  func.func @transform_5(%arg0: i32) -> (i32, i32) {
    %c0_i32 = arith.constant 0 : i32
    %c0_i32_0 = arith.constant 0 : i32
    return %arg0, %c0_i32 : i32, i32
  }
}

</mosaic_0001>

<bundles_post_ra>
// kernel: _ddpg_forward_impl.1
= control target key start
LH: loop header
LB: loop body
LE: loop exit
PB: predicated region body
PF: predicated region fallthrough
CT: control target
= control target key end

     0   :  { %v30_v28 = vlaneseq  ;;  %v1124_v36 = vmov 1983009808   ;;  %s1383_s0 = inlined_call_operand.vmem [shape: f32[2,1024], index: 0, kind: input, shape index: {}]   ;;  %s1384_s1 = inlined_call_operand.vmem [shape: bf16[1024,32], index: 1, kind: input, shape index: {}]   ;;  %s1385_s2 = inlined_call_operand.vmem [shape: f32[1,32], index: 2, kind: input, shape index: {}]   ;;  %s1386_s3 = inlined_call_operand.vmem [shape: f32[32,4], index: 3, kind: input, shape index: {}]   ;;  %s1387_s4 = inlined_call_operand.vmem [shape: f32[1,4], index: 4, kind: input, shape index: {}]   ;;  %s1388_s5 = inlined_call_operand.hbm [shape: f32[2,4], index: 5, kind: output, shape index: {}]  }
   0x1   :  { %v1034_v0 = vld [vmem:[%s1384_s1 + $0x78] sm:$0xff]   ;;  %v1038_v4 = vld [vmem:[%s1384_s1 + $0x70] sm:$0xff]   ;;  %v1042_v8 = vld [vmem:[%s1384_s1 + $0x68] sm:$0xff]   ;;  %v28_v37 = vunpack.c.l.s4 %v1124_v36 }
   0x2   :  { %v1035_v1 = vld [vmem:[%s1384_s1 + $0xf8] sm:$0xff]   ;;  %926 = vmatprep.subr.bf16.mxu0 %v1034_v0  ;;  %v1039_v5 = vld [vmem:[%s1384_s1 + $0xf0] sm:$0xff]   ;;  %v1043_v9 = vld [vmem:[%s1384_s1 + $0xe8] sm:$0xff]   ;;  %v31_v33 = vshrl.u32 %v30_v28, 7 }
   0x3   :  { %v1036_v2 = vld [vmem:[%s1384_s1 + $0x38] sm:$0xff]   ;;  %948 = vmatprep.subr.bf16.mxu1 %v1035_v1  ;;  %v1040_v6 = vld [vmem:[%s1384_s1 + $0x30] sm:$0xff]   ;;  %v1044_v10 = vld [vmem:[%s1384_s1 + $0x28] sm:$0xff]   ;;  %v29_v39 = vunpack.c.0.s8 %v28_v37 }
   0x4   :  { %v1037_v3 = vld [vmem:[%s1384_s1 + $0xb8] sm:$0xff]   ;;  %927 = vmatpush3.bf16.msra.mxu0 %v1036_v2  ;;  %v1041_v7 = vld [vmem:[%s1384_s1 + $0xb0] sm:$0xff]   ;;  %v1045_v11 = vld [vmem:[%s1384_s1 + $0xa8] sm:$0xff]  }
   0x5   :  { %949 = vmatpush3.bf16.msra.mxu1 %v1037_v3  ;;  %928 = vmatprep.subr.bf16.mxu0 %v1038_v4  ;;  %v1046_v12 = vld [vmem:[%s1384_s1 + $0x60] sm:$0xff]   ;;  %v1050_v16 = vld [vmem:[%s1384_s1 + $0x58] sm:$0xff]   ;;  %v1054_v20 = vld [vmem:[%s1384_s1 + $0x50] sm:$0xff]   ;;  %v1263_v41 = vsub.s32 %v29_v39, %v31_v33 }
   0x6   :  { %950 = vmatprep.subr.bf16.mxu1 %v1039_v5  ;;  %v1047_v13 = vld [vmem:[%s1384_s1 + $0xe0] sm:$0xff]   ;;  %v1051_v17 = vld [vmem:[%s1384_s1 + $0xd8] sm:$0xff]   ;;  %v1055_v21 = vld [vmem:[%s1384_s1 + $0xd0] sm:$0xff]  }
   0x7   :  { %v1048_v14 = vld [vmem:[%s1384_s1 + $0x20] sm:$0xff]   ;;  %v1052_v18 = vld [vmem:[%s1384_s1 + $0x18] sm:$0xff]   ;;  %v1056_v22 = vld [vmem:[%s1384_s1 + $0x10] sm:$0xff]  }
   0x8   :  { %929 = vmatpush3.bf16.msra.mxu0 %v1040_v6  ;;  %v1049_v15 = vld [vmem:[%s1384_s1 + $0xa0] sm:$0xff]   ;;  %v1053_v19 = vld [vmem:[%s1384_s1 + $0x98] sm:$0xff]   ;;  %v1057_v23 = vld [vmem:[%s1384_s1 + $0x90] sm:$0xff]  }
   0x9   :  { %951 = vmatpush3.bf16.msra.mxu1 %v1041_v7  ;;  %930 = vmatprep.subr.bf16.mxu0 %v1042_v8  ;;  %v1058_v24 = vld [vmem:[%s1384_s1 + $0x48] sm:$0xff]   ;;  %v1062_v29 = vld [vmem:[%s1384_s1 + $0x40] sm:$0xff]   ;;  %v1067_v35 = vld [vmem:[%s1384_s1 + $0x178] sm:$0xff]  }
   0xa   :  { %952 = vmatprep.subr.bf16.mxu1 %v1043_v9  ;;  %v1059_v25 = vld [vmem:[%s1384_s1 + $0xc8] sm:$0xff]   ;;  %v1063_v30 = vld [vmem:[%s1384_s1 + $0xc0] sm:$0xff]   ;;  %v1068_v38 = vld [vmem:[%s1384_s1 + $0x1f8] sm:$0xff]  }
   0xb   :  { %v1060_v26 = vld [vmem:[%s1384_s1 + $0x8] sm:$0xff]   ;;  %v1064_v31 = vld [vmem:[%s1384_s1] sm:$0xff]   ;;  %v1069_v46 = vld [vmem:[%s1384_s1 + $0x138] sm:$0xff]  }
   0xc   :  { %931 = vmatpush3.bf16.msra.mxu0 %v1044_v10  ;;  %v1061_v27 = vld [vmem:[%s1384_s1 + $0x88] sm:$0xff]   ;;  %v1065_v32 = vld [vmem:[%s1384_s1 + $0x80] sm:$0xff]   ;;  %v1070_v49 = vld [vmem:[%s1384_s1 + $0x1b8] sm:$0xff]  }
   0xd   :  { %953 = vmatpush3.bf16.msra.mxu1 %v1045_v11  ;;  %932 = vmatprep.subr.bf16.mxu0 %v1046_v12  ;;  %v22_v34 = vld [vmem:[%s1383_s0] sm:$0xff]  ;;  %v1071_v52 = vld [vmem:[%s1384_s1 + $0x170] sm:$0xff]   ;;  %v1075_v56 = vld [vmem:[%s1384_s1 + $0x168] sm:$0xff]  }
   0xe   :  { %954 = vmatprep.subr.bf16.mxu1 %v1047_v13  ;;  %v26_v40 = vcombine.high %v22_v34, %v22_v34  ;;  %v33_v42 = vrot.slane %v22_v34, %v1263_v41  ;;  %v1072_v53 = vld [vmem:[%s1384_s1 + $0x1f0] sm:$0xff]   ;;  %v1076_v57 = vld [vmem:[%s1384_s1 + $0x1e8] sm:$0xff]   ;;  %v1079_v60 = vld [vmem:[%s1384_s1 + $0x160] sm:$0xff]  }
   0xf   :  { %v1073_v54 = vld [vmem:[%s1384_s1 + $0x130] sm:$0xff]   ;;  %v1077_v58 = vld [vmem:[%s1384_s1 + $0x128] sm:$0xff]   ;;  %v1080_v61 = vld [vmem:[%s1384_s1 + $0x1e0] sm:$0xff]  }
  0x10   :  { %933 = vmatpush3.bf16.msra.mxu0 %v1048_v14  ;;  %v40_v43 = vrot.slane %v26_v40, %v1263_v41  ;;  %v41_v44 = vcombine.high %v33_v42, %v33_v42  ;;  %v68_v47 = vpack.c.bf16 %v33_v42, %v33_v42  ;;  %v1074_v55 = vld [vmem:[%s1384_s1 + $0x1b0] sm:$0xff]   ;;  %v1078_v59 = vld [vmem:[%s1384_s1 + $0x1a8] sm:$0xff]   ;;  %v1081_v62 = vld [vmem:[%s1384_s1 + $0x120] sm:$0xff]  }
  0x11   :  { %955 = vmatpush3.bf16.msra.mxu1 %v1049_v15  ;;  %934 = vmatprep.subr.bf16.mxu0 %v1050_v16  ;;  %v1082_v63 = vld [vmem:[%s1384_s1 + $0x1a0] sm:$0xff]   ;;  %v1083_v0 = vld [vmem:[%s1384_s1 + $0x158] sm:$0xff]   ;;  %v1087_v4 = vld [vmem:[%s1384_s1 + $0x150] sm:$0xff]  }
  0x12   :  { %956 = vmatprep.subr.bf16.mxu1 %v1051_v17  ;;  %v42_v45 = vcombine.high %v40_v43, %v40_v43  ;;  %v70_v48 = vpack.c.bf16 %v40_v43, %v40_v43  ;;  %v69_v50 = vpack.c.bf16 %v41_v44, %v41_v44  ;;  %v1084_v1 = vld [vmem:[%s1384_s1 + $0x1d8] sm:$0xff]   ;;  %v1088_v5 = vld [vmem:[%s1384_s1 + $0x1d0] sm:$0xff]   ;;  %v1091_v8 = vld [vmem:[%s1384_s1 + $0x148] sm:$0xff]  }
  0x13   :  { %v1085_v2 = vld [vmem:[%s1384_s1 + $0x118] sm:$0xff]   ;;  %v1089_v6 = vld [vmem:[%s1384_s1 + $0x110] sm:$0xff]   ;;  %v1092_v9 = vld [vmem:[%s1384_s1 + $0x1c8] sm:$0xff]  }
  0x14   :  { %935 = vmatpush3.bf16.msra.mxu0 %v1052_v18  ;;  %v71_v51 = vpack.c.bf16 %v42_v45, %v42_v45  ;;  %627 = vmatprep.mubr.bf16.mxu0 %v69_v50  ;;  %v1086_v3 = vld [vmem:[%s1384_s1 + $0x198] sm:$0xff]   ;;  %v1090_v7 = vld [vmem:[%s1384_s1 + $0x190] sm:$0xff]   ;;  %v23_v10 = vld [vmem:[%s1383_s0 + $0x8] sm:$0xff] }
  0x15   :  { %957 = vmatpush3.bf16.msra.mxu1 %v1053_v19  ;;  %936 = vmatprep.subr.bf16.mxu0 %v1054_v20 }
  0x16   :  { %958 = vmatprep.subr.bf16.mxu1 %v1055_v21  ;;  %667 = vmatprep.mubr.bf16.mxu1 %v71_v51 }
  0x18   :  { %937 = vmatpush3.bf16.msra.mxu0 %v1056_v22 }
  0x19   :  { %959 = vmatpush3.bf16.msra.mxu1 %v1057_v23  ;;  %938 = vmatprep.subr.bf16.mxu0 %v1058_v24 }
  0x1a   :  { %960 = vmatprep.subr.bf16.mxu1 %v1059_v25 }
  0x1c   :  { %939 = vmatpush3.bf16.msra.mxu0 %v1060_v26 }
  0x1d   :  { %961 = vmatpush3.bf16.msra.mxu1 %v1061_v27  ;;  %940 = vmatprep.subr.bf16.mxu0 %v1062_v29 }
  0x1e   :  { %962 = vmatprep.subr.bf16.mxu1 %v1063_v30 }
  0x20   :  { %941 = vmatpush3.bf16.msra.mxu0 %v1064_v31 }
  0x21   :  { %963 = vmatpush3.bf16.msra.mxu1 %v1065_v32  ;;  %970 = vmatprep.subr.bf16.mxu0 %v1067_v35 }
  0x22   :  { %992 = vmatprep.subr.bf16.mxu1 %v1068_v38 }
  0x23   :  { %628 = vmatmul.mubr.bf16.vlgmr.msra.gmra.mxu0 %v68_v47 }
  0x24   :  { %668 = vmatmul.mubr.bf16.vlgmr.msra.gmra.mxu1 %v70_v48  ;;  %971 = vmatpush3.bf16.msra.mxu0 %v1069_v46 }
  0x25   :  { %993 = vmatpush3.bf16.msra.mxu1 %v1070_v49  ;;  %972 = vmatprep.subr.bf16.mxu0 %v1071_v52 }
  0x26   :  { %994 = vmatprep.subr.bf16.mxu1 %v1072_v53 }
  0x28   :  { %973 = vmatpush3.bf16.msra.mxu0 %v1073_v54 }
  0x29   :  { %995 = vmatpush3.bf16.msra.mxu1 %v1074_v55  ;;  %974 = vmatprep.subr.bf16.mxu0 %v1075_v56 }
  0x2a   :  { %996 = vmatprep.subr.bf16.mxu1 %v1076_v57 }
  0x2c   :  { %975 = vmatpush3.bf16.msra.mxu0 %v1077_v58 }
  0x2d   :  { %997 = vmatpush3.bf16.msra.mxu1 %v1078_v59  ;;  %976 = vmatprep.subr.bf16.mxu0 %v1079_v60 }
  0x2e   :  { %998 = vmatprep.subr.bf16.mxu1 %v1080_v61 }
  0x30   :  { %977 = vmatpush3.bf16.msra.mxu0 %v1081_v62 }
  0x31   :  { %999 = vmatpush3.bf16.msra.mxu1 %v1082_v63  ;;  %978 = vmatprep.subr.bf16.mxu0 %v1083_v0 }
  0x32   :  { %1000 = vmatprep.subr.bf16.mxu1 %v1084_v1 }
  0x34   :  { %979 = vmatpush3.bf16.msra.mxu0 %v1085_v2 }
  0x35   :  { %1001 = vmatpush3.bf16.msra.mxu1 %v1086_v3  ;;  %980 = vmatprep.subr.bf16.mxu0 %v1087_v4 }
  0x36   :  { %1002 = vmatprep.subr.bf16.mxu1 %v1088_v5 }
  0x37   :  { %10 = vsyncpa [#allocation3], 0  ;;  %v50_v11 = vrot.slane %v23_v10, %v1263_v41  ;;  %v43_v12 = vcombine.high %v23_v10, %v23_v10  ;;  %v1093_v13 = vld [vmem:[%s1384_s1 + $0x108] sm:$0xff]   ;;  %v1095_v17 = vld [vmem:[%s1384_s1 + $0x140] sm:$0xff]   ;;  %v1125_v26 = vmov 0.0   ;;  %vm1126_vm0 = vmmov 0  }
  0x38   :  { %981 = vmatpush3.bf16.msra.mxu0 %v1089_v6  ;;  %v1094_v14 = vld [vmem:[%s1384_s1 + $0x188] sm:$0xff]   ;;  %v1096_v18 = vld [vmem:[%s1384_s1 + $0x1c0] sm:$0xff]   ;;  %v759_v27 = vld [vmem:[%s1386_s3 + $0x18] sm:$0xff]  ;;  %vm767_vm1 = vcmask 261120   ;;  %s1127_s8 = smov [#allocation2]   ;;  %vm843_vm2 = vcmask 25600  }
  0x39   :  { %1003 = vmatpush3.bf16.msra.mxu1 %v1090_v7  ;;  %v58_v15 = vcombine.high %v50_v11, %v50_v11  ;;  %v57_v16 = vrot.slane %v43_v12, %v1263_v41  ;;  %982 = vmatprep.subr.bf16.mxu0 %v1091_v8  ;;  %v1097_v21 = vld [vmem:[%s1384_s1 + $0x100] sm:$0xff]   ;;  %v72_v24 = vpack.c.bf16 %v50_v11, %v50_v11  ;;  %v758_v28 = vld [vmem:[%s1386_s3 + $0x10] sm:$0xff]  ;;  %v757_v29 = vld [vmem:[%s1386_s3 + $0x8] sm:$0xff]  ;;  %s851_s9 = sshll.u32 %s1127_s8, 4  ;;  %s852_s9 = int_to_ptr.vmem [resolvable:$true] %s851_s9 }
  0x3a   :  { %1004 = vmatprep.subr.bf16.mxu1 %v1092_v9  ;;  %v1098_v22 = vld [vmem:[%s1384_s1 + $0x180] sm:$0xff]   ;;  %s1102_s10 = scalar_lea.vmem %s852_s9, 32  ;;  %p1107_p1 = scmp.lt.s32.totalorder %s852_s9, %s852_s9 }
  0x3b   :  { %v73_v19 = vpack.c.bf16 %v58_v15, %v58_v15  ;;  %v59_v20 = vcombine.high %v57_v16, %v57_v16  ;;  %v74_v25 = vpack.c.bf16 %v57_v16, %v57_v16  ;;  %v756_v30 = vld [vmem:[%s1386_s3] sm:$0xff]  ;;  %p1103_p0 = scmp.ne.s32.totalorder %s852_s9, %s1102_s10  ;;  %p1108_p2 = scmp.lt.s32.totalorder %s1102_s10, %s1102_s10 }
  0x3c   :  { %983 = vmatpush3.bf16.msra.mxu0 %v1093_v13  ;;  %v859_v40 = vld [vmem:[%s1385_s2] ss:$0 sm:$0xff] }
  0x3d   :  { %1005 = vmatpush3.bf16.msra.mxu1 %v1094_v14  ;;  %v75_v23 = vpack.c.bf16 %v59_v20, %v59_v20  ;;  %984 = vmatprep.subr.bf16.mxu0 %v1095_v17  ;;  %v924_v57 = vld [vmem:[%s1387_s4] ss:$0 sm:$0xff]  ;;  %p1109_p3 = por %p1108_p2, %p1107_p1 }
  0x3e   :  { %1006 = vmatprep.subr.bf16.mxu1 %v1096_v18  ;;  %707 = vmatprep.mubr.bf16.mxu0 %v73_v19 }
  0x3f   :  { %747 = vmatprep.mubr.bf16.mxu1 %v75_v23  ;;  %p1110_p4 = pnand %p1109_p3, %p1103_p0 }
  0x40   :  { %985 = vmatpush3.bf16.msra.mxu0 %v1097_v21 }
  0x41   :  { %1007 = vmatpush3.bf16.msra.mxu1 %v1098_v22  ;;  %1019 = vmatprep.subr.mxu0 %v1125_v26 }
  0x43   :  { %708 = vmatmul.mubr.bf16.vlgmr.msra.gmra.mxu0 %v72_v24 }
  0x44   :  { %748 = vmatmul.mubr.bf16.vlgmr.msra.gmra.mxu1 %v74_v25  ;;  %1020 = vmatpush3.msra.mxu0 %v759_v27 }
  0x45   :  { %1021 = vmatprep.subr.mxu0 %v1125_v26  ;;  %1027 = vmatprep.mubr.msk.f32.mxu0 %vm1126_vm0, %v1125_v26 }
  0x46   :  { %1022 = vmatpush3.msra.mxu0 %v758_v28 }
  0x47   :  { %1023 = vmatprep.subr.mxu0 %v1125_v26 }
  0x48   :  { %1024 = vmatpush3.msra.mxu0 %v757_v29 }
  0x49   :  { %1025 = vmatprep.subr.mxu0 %v1125_v26 }
  0x4a   :  { %1026 = vmatpush3.msra.mxu0 %v756_v30 }
  0xe3   :  { %v942_v31 = vpop.f32.mrf.mxu0 }
  0xe4   :  { %v964_v32 = vpop.f32.mrf.mxu1 }
  0xe5   :  { %v943_v33 = vpop.f32.mrf.mxu0 }
  0xe6   :  { %v965_v34 = vpop.f32.mrf.mxu1  ;;  %v944_v39 = vadd.f32 %v943_v33, %v942_v31 }
  0xe7   :  { %v945_v35 = vpop.f32.mrf.mxu0  ;;  %v966_v42 = vadd.f32 %v965_v34, %v964_v32 }
  0xe8   :  { %v967_v36 = vpop.f32.mrf.mxu1  ;;  %v630_v41 = vadd.f32 %v944_v39, %v859_v40 }
  0xe9   :  { %v946_v37 = vpop.f32.mrf.mxu0 }
  0xea   :  { %v968_v38 = vpop.f32.mrf.mxu1  ;;  %v670_v47 = vadd.f32 %v966_v42, %v630_v41 }
 0x103   :  { %v986_v43 = vpop.f32.mrf.mxu0 }
 0x104   :  { %v1008_v44 = vpop.f32.mrf.mxu1 }
 0x105   :  { %v987_v45 = vpop.f32.mrf.mxu0 }
 0x106   :  { %v1009_v46 = vpop.f32.mrf.mxu1  ;;  %v988_v48 = vadd.f32 %v987_v45, %v986_v43 }
 0x107   :  { %v989_v49 = vpop.f32.mrf.mxu0  ;;  %v1010_v52 = vadd.f32 %v1009_v46, %v1008_v44 }
 0x108   :  { %v1011_v50 = vpop.f32.mrf.mxu1  ;;  %v710_v51 = vadd.f32 %v988_v48, %v670_v47 }
 0x109   :  { %v990_v53 = vpop.f32.mrf.mxu0 }
 0x10a   :  { %v1012_v54 = vpop.f32.mrf.mxu1  ;;  %v750_v55 = vadd.f32 %v1010_v52, %v710_v51 }
 0x10c   :  { %v755_v56 = vmax.f32 %v750_v55, 0.0 }
 0x10e   :  { %1028 = vmatmul.mubr.msk.f32.vlgmr.msra.gmra.mxu0 %vm767_vm1, %v755_v56 }
 0x1ce   :  { %v837_v58 = vpop.f32.mrf.mxu0 }
 0x1cf   :  { %v838_v59 = vadd.f32 %v924_v57, %v837_v58 }
 0x1d0   :  { %v1029_v60 = vpop.f32.mrf.mxu0 }
 0x1d1   :  { %1100 = vtanh.f32 %v838_v59 }
 0x1de   :  { %v1101_v61 = vpop.eup %1100 }
 0x1df   :  { %v842_v62 = vmul.f32 2.0, %v1101_v61 }
 0x1e1   :  { %844 = vst.msk [vmem:[#allocation2] sm:$0x3] %vm843_vm2, %v842_v62 }
 0x1e2   :  { %1113 = shalt.err (!%p1110_p4)
}
 0x1e3   :  { %854 = dma.vmem_to_hbm [thread:$0]  %s852_s9, 32, %s1388_s5, [#allocation3]  }
 0x1e4   :  { %1122 = dma.done.wait [#allocation3], 32  }
 0x1e5   :  { %1123 = vsyncadd [#allocation3], 4294967264 }
 0x1e6   :  { %858 = vsyncpa [#allocation3], 1 }

</bundles_post_ra>
